<compile_context>
chip_gen: v6e
topology: v6e:2x2x1
jax: 0.10.0
libtpu: 0.0.40
codegen_flags: <defaults>
</compile_context>

<pallas_src>
import functools

import numpy as np
import jax
import jax.numpy as jnp
from jax import lax
from jax.experimental import pallas as pl
from jax.experimental.pallas import tpu as pltpu


def _hard_binary_conv_kernel(x_ref, w_ref, s_ref, m_ref, o_ref, *,
                             K, Cp, H, W, Nb, padding):
    """One block of Nb batch samples per grid step.

    x_ref: (Nb, Cp, H*W + 2*B) f32  pixels lane-dense, B = padding*W + padding
                                    zero lanes on each side, channels padded to Cp
    w_ref: (O, K*K*Cp)         bf16 exact {-1, 0, +1} weight signs, m = (kh, kw, c)
    s_ref: (O, 1)              f32  per-output-channel scale (mean |W|)
    m_ref: (K, H*W)            f32  0/1 horizontal-border masks (one per kw)
    o_ref: (Nb, O, H*W)             lane-dense output block
    """
    HW = H * W
    B = padding * W + padding

    w = w_ref[...]          # (O, K*K*Cp) bf16, loaded once per step
    s = s_ref[...]          # (O, 1)      f32
    masks = m_ref[...]      # (K, HW)     f32

    for i in range(Nb):
        x_i = x_ref[i]      # (Cp, HW + 2B) f32 — single load; taps are value slices
        taps = []
        for kh in range(K):
            for kw in range(K):
                # Output pixel p = ho*W + wo needs input flat index p + delta with
                # delta = (kh - pad)*W + (kw - pad).  The wrapper pre-padded B zero
                # lanes per side, so this is always an in-bounds static lane slice
                # (lowers to XLU lane shifts; no wrap-around, no row mask needed).
                off = B + (kh - padding) * W + (kw - padding)
                tap = x_i[:, off:off + HW]                       # (Cp, HW) f32
                if kw != padding:
                    # Zero lanes whose horizontal source is outside the image
                    # (they would otherwise read the neighbouring row).  f32 VPU
                    # multiply (v5e has no bf16 VPU).
                    tap = tap * masks[kw:kw + 1, :]
                taps.append(tap)
        # Cp = 8 rows per piece -> sublane-tile-aligned f32 concatenate; one tiny
        # (K*K*Cp, HW) cast to bf16 feeds the single MXU matmul.
        xcol = jnp.concatenate(taps, axis=0).astype(jnp.bfloat16)
        y = jnp.dot(w, xcol, preferred_element_type=jnp.float32)   # (O, HW) f32
        # Per-channel scale applied in f32 on the accumulator (weights stay +/-1).
        o_ref[i] = (y * s).astype(o_ref.dtype)


def hard_binary_conv(x_nchw, weight_ockk, stride=1, padding=1):
    """x_nchw: (N, C, H, W), weight_ockk: (O, C, K, K) -> (N, O, Ho, Wo)."""
    N, C, H, W = x_nchw.shape
    O, C2, K, K2 = weight_ockk.shape
    assert C == C2 and K == K2
    Ho = (H + 2 * padding - K) // stride + 1
    Wo = (W + 2 * padding - K) // stride + 1
    if stride != 1 or Ho != H or Wo != W:
        # TODO(synk): general stride / non-"same" padding needs the output-raster
        # subsampling expressed in the grid/index_map (the strided sublane slice
        # of the old version may not lower); only the Bi-Real default
        # (stride=1, kernel_size == 2*padding + 1) is implemented here.
        raise NotImplementedError(
            "Pallas HardBinaryConv: only stride=1 with K == 2*padding+1 supported")

    HW = H * W
    B = padding * W + padding            # lane pad per side of the flattened image
    Cp = ((C + 7) // 8) * 8              # channels padded to the f32 sublane tile

    # ---- weights: exact +/-1 bf16 signs + f32 per-channel scale --------------
    w = weight_ockk.astype(jnp.float32)
    scale = jnp.mean(jnp.abs(w), axis=(1, 2, 3)).reshape(O, 1)       # f32, exact
    sgn = jnp.sign(w)                                                 # {-1, 0, +1}
    sgn = jnp.pad(sgn, ((0, 0), (0, Cp - C), (0, 0), (0, 0)))         # zero chans
    w_flat = jnp.transpose(sgn, (0, 2, 3, 1)).reshape(O, K * K * Cp)  # m=(kh,kw,c)
    w_flat = w_flat.astype(jnp.bfloat16)                              # exact in bf16

    # ---- input: (N,C,H,W) -> (N, Cp, HW + 2B); no transpose, just reshape+pad --
    x = x_nchw.astype(jnp.float32).reshape(N, C, HW)
    x = jnp.pad(x, ((0, 0), (0, Cp - C), (B, B)))

    # ---- horizontal-border masks (depend only on kw), built on host -----------
    col = np.arange(HW, dtype=np.int64) % W
    masks = np.stack([((col + kw - padding >= 0) & (col + kw - padding < W))
                      for kw in range(K)]).astype(np.float32)         # (K, HW)
    masks = jnp.asarray(masks)

    # ---- batch blocking: fat grid steps, but keep >= 2 steps for v7x's 2 TCs --
    if N % 2 == 0 and N >= 4:
        Nb = N // 2
    else:
        Nb = 1
    grid = (N // Nb,)

    kernel = functools.partial(_hard_binary_conv_kernel, K=K, Cp=Cp, H=H, W=W,
                               Nb=Nb, padding=padding)
    y = pl.pallas_call(
        kernel,
        out_shape=jax.ShapeDtypeStruct((N, O, HW), x_nchw.dtype),
        grid=grid,
        in_specs=[
            pl.BlockSpec((Nb, Cp, HW + 2 * B), lambda n: (n, 0, 0)),
            pl.BlockSpec((O, K * K * Cp), lambda n: (0, 0)),
            pl.BlockSpec((O, 1), lambda n: (0, 0)),
            pl.BlockSpec((K, HW), lambda n: (0, 0)),
        ],
        out_specs=pl.BlockSpec((Nb, O, HW), lambda n: (n, 0, 0)),
        compiler_params=pltpu.CompilerParams(
            dimension_semantics=("parallel",)),
    )(x, w_flat, scale, masks)

    # (N, O, Ho*Wo) -> (N, O, Ho, Wo): pure split of the last dim, no data movement.
    return y.reshape(N, O, Ho, Wo)


def _reference(x_nchw, weight_ockk, stride=1, padding=1):
    # Pure-JAX f32 reference of the PyTorch forward (validation only).
    w = weight_ockk.astype(jnp.float32)
    scale = jnp.mean(jnp.abs(w), axis=(1, 2, 3), keepdims=True)
    bw = scale * jnp.sign(w)
    return lax.conv_general_dilated(
        x_nchw.astype(jnp.float32), bw,
        window_strides=(stride, stride),
        padding=[(padding, padding), (padding, padding)],
        dimension_numbers=('NCHW', 'OIHW', 'NCHW'))


if __name__ == "__main__":
    # HardBinaryConv(in_chn=4, out_chn=8, kernel_size=3, stride=1, padding=1)
    N, C, H, W = 2, 4, 16, 16
    O, K, stride, padding = 8, 3, 1, 1

    key = jax.random.PRNGKey(0)
    kx, kw = jax.random.split(key)
    x = jax.random.normal(kx, (N, C, H, W), dtype=jnp.float32)
    # torch.rand(shape) * 0.001  ->  uniform [0, 0.001)
    weight = jax.random.uniform(kw, (O, C, K, K), dtype=jnp.float32) * 0.001

    fwd = jax.jit(functools.partial(hard_binary_conv, stride=stride,
                                    padding=padding))
    y = jax.block_until_ready(fwd(x, weight))

    y_ref = _reference(x, weight, stride=stride, padding=padding)
    assert y.shape == (N, O, H, W), y.shape
    # Only remaining error source: bf16 rounding of the im2col activations
    # (f32 scale + exact +/-1 weights) -> tolerance tightened vs. previous version.
    err = float(jnp.max(jnp.abs(y - y_ref)))
    assert jnp.allclose(y, y_ref, atol=2e-4, rtol=1e-2), err

    print("KERNEL_OK")
</pallas_src>

<mosaic_0001>
module attributes {stable_mosaic.version = 11 : i64} {
  func.func @_hard_binary_conv_kernel(%arg0: i32, %arg1: memref<1x8x290xf32, #tpu.memory_space<vmem>>, %arg2: memref<8x72xbf16, #tpu.memory_space<vmem>>, %arg3: memref<8x1xf32, #tpu.memory_space<vmem>>, %arg4: memref<3x256xf32, #tpu.memory_space<vmem>>, %arg5: memref<1x8x256xf32, #tpu.memory_space<vmem>>) attributes {dimension_semantics = [#tpu.dimension_semantics<parallel>], iteration_bounds = array<i64: 2>, scalar_prefetch = 0 : i64, scratch_operands = 0 : i64, tpu.core_type = #tpu.core_type<tc>, window_params = [{transform_indices = @transform_0, window_bounds = array<i64: 1, 8, 290>}, {pipeline_mode = #tpu.pipeline_mode<synchronous>, transform_indices = @transform_1, window_bounds = array<i64: 8, 72>}, {pipeline_mode = #tpu.pipeline_mode<synchronous>, transform_indices = @transform_2, window_bounds = array<i64: 8, 1>}, {pipeline_mode = #tpu.pipeline_mode<synchronous>, transform_indices = @transform_3, window_bounds = array<i64: 3, 256>}, {transform_indices = @transform_4, window_bounds = array<i64: 1, 8, 256>}]} {
    %c0 = arith.constant 0 : index
    %c0_0 = arith.constant 0 : index
    %0 = vector.load %arg2[%c0, %c0_0] : memref<8x72xbf16, #tpu.memory_space<vmem>>, vector<8x72xbf16>
    %c0_1 = arith.constant 0 : index
    %c0_2 = arith.constant 0 : index
    %1 = vector.load %arg3[%c0_1, %c0_2] : memref<8x1xf32, #tpu.memory_space<vmem>>, vector<8x1xf32>
    %c0_3 = arith.constant 0 : index
    %c0_4 = arith.constant 0 : index
    %2 = vector.load %arg4[%c0_3, %c0_4] : memref<3x256xf32, #tpu.memory_space<vmem>>, vector<3x256xf32>
    %c0_5 = arith.constant 0 : index
    %c0_6 = arith.constant 0 : index
    %c0_7 = arith.constant 0 : index
    %3 = vector.load %arg1[%c0_5, %c0_6, %c0_7] : memref<1x8x290xf32, #tpu.memory_space<vmem>>, vector<1x8x290xf32>
    %4 = vector.shape_cast %3 : vector<1x8x290xf32> to vector<8x290xf32>
    %5 = vector.extract_strided_slice %4 {offsets = [0, 0], sizes = [8, 256], strides = [1, 1]} : vector<8x290xf32> to vector<8x256xf32>
    %6 = vector.extract_strided_slice %2 {offsets = [0, 0], sizes = [1, 256], strides = [1, 1]} : vector<3x256xf32> to vector<1x256xf32>
    %7 = vector.broadcast %6 : vector<1x256xf32> to vector<8x256xf32>
    %8 = arith.mulf %5, %7 : vector<8x256xf32>
    %9 = vector.extract_strided_slice %4 {offsets = [0, 1], sizes = [8, 256], strides = [1, 1]} : vector<8x290xf32> to vector<8x256xf32>
    %10 = vector.extract_strided_slice %4 {offsets = [0, 2], sizes = [8, 256], strides = [1, 1]} : vector<8x290xf32> to vector<8x256xf32>
    %11 = vector.extract_strided_slice %2 {offsets = [2, 0], sizes = [1, 256], strides = [1, 1]} : vector<3x256xf32> to vector<1x256xf32>
    %12 = vector.broadcast %11 : vector<1x256xf32> to vector<8x256xf32>
    %13 = arith.mulf %10, %12 : vector<8x256xf32>
    %14 = vector.extract_strided_slice %4 {offsets = [0, 16], sizes = [8, 256], strides = [1, 1]} : vector<8x290xf32> to vector<8x256xf32>
    %15 = vector.extract_strided_slice %2 {offsets = [0, 0], sizes = [1, 256], strides = [1, 1]} : vector<3x256xf32> to vector<1x256xf32>
    %16 = vector.broadcast %15 : vector<1x256xf32> to vector<8x256xf32>
    %17 = arith.mulf %14, %16 : vector<8x256xf32>
    %18 = vector.extract_strided_slice %4 {offsets = [0, 17], sizes = [8, 256], strides = [1, 1]} : vector<8x290xf32> to vector<8x256xf32>
    %19 = vector.extract_strided_slice %4 {offsets = [0, 18], sizes = [8, 256], strides = [1, 1]} : vector<8x290xf32> to vector<8x256xf32>
    %20 = vector.extract_strided_slice %2 {offsets = [2, 0], sizes = [1, 256], strides = [1, 1]} : vector<3x256xf32> to vector<1x256xf32>
    %21 = vector.broadcast %20 : vector<1x256xf32> to vector<8x256xf32>
    %22 = arith.mulf %19, %21 : vector<8x256xf32>
    %23 = vector.extract_strided_slice %4 {offsets = [0, 32], sizes = [8, 256], strides = [1, 1]} : vector<8x290xf32> to vector<8x256xf32>
    %24 = vector.extract_strided_slice %2 {offsets = [0, 0], sizes = [1, 256], strides = [1, 1]} : vector<3x256xf32> to vector<1x256xf32>
    %25 = vector.broadcast %24 : vector<1x256xf32> to vector<8x256xf32>
    %26 = arith.mulf %23, %25 : vector<8x256xf32>
    %27 = vector.extract_strided_slice %4 {offsets = [0, 33], sizes = [8, 256], strides = [1, 1]} : vector<8x290xf32> to vector<8x256xf32>
    %28 = vector.extract_strided_slice %4 {offsets = [0, 34], sizes = [8, 256], strides = [1, 1]} : vector<8x290xf32> to vector<8x256xf32>
    %29 = vector.extract_strided_slice %2 {offsets = [2, 0], sizes = [1, 256], strides = [1, 1]} : vector<3x256xf32> to vector<1x256xf32>
    %30 = vector.broadcast %29 : vector<1x256xf32> to vector<8x256xf32>
    %31 = arith.mulf %28, %30 : vector<8x256xf32>
    %32 = tpu.concatenate %8, %9, %13, %17, %18, %22, %26, %27, %31 in 0 : vector<8x256xf32>, vector<8x256xf32>, vector<8x256xf32>, vector<8x256xf32>, vector<8x256xf32>, vector<8x256xf32>, vector<8x256xf32>, vector<8x256xf32>, vector<8x256xf32> -> vector<72x256xf32>
    %33 = arith.truncf %32 : vector<72x256xf32> to vector<72x256xbf16>
    %cst = arith.constant dense<0.000000e+00> : vector<8x256xf32>
    %34 = tpu.matmul %0, %33, %cst {dimension_numbers = #tpu.dot_dimension_numbers<[1], [0], [0], [1], [0, 0, 1, 1], [], []>} : vector<8x72xbf16>, vector<72x256xbf16>, vector<8x256xf32> -> vector<8x256xf32>
    %35 = vector.broadcast %1 : vector<8x1xf32> to vector<8x256xf32>
    %36 = arith.mulf %34, %35 : vector<8x256xf32>
    %c0_8 = arith.constant 0 : index
    %c0_9 = arith.constant 0 : index
    %c0_10 = arith.constant 0 : index
    %37 = vector.load %arg5[%c0_8, %c0_9, %c0_10] : memref<1x8x256xf32, #tpu.memory_space<vmem>>, vector<1x8x256xf32>
    %38 = vector.shape_cast %37 : vector<1x8x256xf32> to vector<8x256xf32>
    %39 = vector.shape_cast %36 : vector<8x256xf32> to vector<1x8x256xf32>
    tpu.vector_store %arg5[%c0_8, %c0_9, %c0_10], %39 {strides = array<i32>} : memref<1x8x256xf32, #tpu.memory_space<vmem>>, vector<1x8x256xf32>,
    return
  }
  func.func @transform_0(%arg0: i32) -> (i32, i32, i32) {
    %c0_i32 = arith.constant 0 : i32
    %c0_i32_0 = arith.constant 0 : i32
    %c0_i32_1 = arith.constant 0 : i32
    return %arg0, %c0_i32, %c0_i32_0 : i32, i32, i32
  }
  func.func @transform_1(%arg0: i32) -> (i32, i32) {
    %c0_i32 = arith.constant 0 : i32
    %c0_i32_0 = arith.constant 0 : i32
    %c0_i32_1 = arith.constant 0 : i32
    return %c0_i32, %c0_i32_0 : i32, i32
  }
  func.func @transform_2(%arg0: i32) -> (i32, i32) {
    %c0_i32 = arith.constant 0 : i32
    %c0_i32_0 = arith.constant 0 : i32
    %c0_i32_1 = arith.constant 0 : i32
    return %c0_i32, %c0_i32_0 : i32, i32
  }
  func.func @transform_3(%arg0: i32) -> (i32, i32) {
    %c0_i32 = arith.constant 0 : i32
    %c0_i32_0 = arith.constant 0 : i32
    %c0_i32_1 = arith.constant 0 : i32
    return %c0_i32, %c0_i32_0 : i32, i32
  }
  func.func @transform_4(%arg0: i32) -> (i32, i32, i32) {
    %c0_i32 = arith.constant 0 : i32
    %c0_i32_0 = arith.constant 0 : i32
    %c0_i32_1 = arith.constant 0 : i32
    return %arg0, %c0_i32, %c0_i32_0 : i32, i32, i32
  }
}

</mosaic_0001>

<bundles_post_ra>
// kernel: hard_binary_conv.1
= control target key start
LH: loop header
LB: loop body
LE: loop exit
PB: predicated region body
PF: predicated region fallthrough
CT: control target
= control target key end

     0   :  { %s664_s15 = smov 0   ;;  %s739_s0 = inlined_call_operand.vmem [shape: f32[2,8,290], index: 0, kind: input, shape index: {}]   ;;  %s740_s1 = inlined_call_operand.vmem [shape: bf16[8,72], index: 1, kind: input, shape index: {}]   ;;  %s741_s2 = inlined_call_operand.vmem [shape: f32[8,1], index: 2, kind: input, shape index: {}]   ;;  %s742_s3 = inlined_call_operand.vmem [shape: f32[3,256], index: 3, kind: input, shape index: {}]   ;;  %s743_s4 = inlined_call_operand.vmem [shape: f32[2,8,256], index: 4, kind: output, shape index: {}]  }
   0x1 LB: > { %s540_s16 = sadd.s32 4294967295, %s623_s15   ;;  %p544_p0 = scmp.ge.s32.totalorder %s623_s15, 1  ;;  %s623_s15 = sphi %s664_s15, %s14_s15  }
   0x2   : > { %p162_p1 = scmp.lt.s32.totalorder %s623_s15, 3 }
   0x4   : > { %p163_p2 = pnand %p544_p0, %p162_p1 }
   0x5   : > { %p188_p3 = scmp.lt.s32.totalorder (!%p163_p2), %s540_s16, 1  ;;  %s625_s19 = smov (!%p163_p2), 34  }
   0x6   : > { %166 = sbr.rel (%p163_p2) target bundleno = 485 (0x1e5), region = 36  ;;  %s626_s20 = smov (!%p163_p2), 32  }
   0x7   : > { %s627_s22 = smov (!%p163_p2), 18   ;;  %s628_s26 = smov (!%p163_p2), 2  }
   0x8   : > { %s629_s27 = smov (!%p163_p2), 16   ;;  %s630_s28 = smov (!%p163_p2), 111  }
   0x9   : > { %s631_s29 = smov (!%p163_p2), 95   ;;  %s632_s30 = smov (!%p163_p2), 96  }
   0xa   : > { %s633_s5 = smov (!%p163_p2), 94   ;;  %s634_s6 = smov (!%p163_p2), 110  }
   0xb   : > { %v206_v0 = vlaneseq  ;;  %v201_v2 = vld [vmem:[%s742_s3] sm:$0x77]  ;;  %s745_s16 = smov (!%p188_p3, %s540_s16), 1  ;;  %vm300_vm0 = vcmask 277504   ;;  %vm288_vm1 = vcmask 261120   ;;  %vm276_vm2 = vcmask 146432  }
   0xc   : > { %s553_s21 = smul.u32 24, %s745_s16  ;;  %vm250_vm3 = vcmask 15360   ;;  %vm264_vm4 = vcmask 130048   ;;  %s635_s7 = smov 126   ;;  %v636_v53 = vmov 0   ;;  %v200_v55 = vld [vmem:[%s741_s2] sm:$0xff] }
   0xd   : > { %v207_v1 = vshrl.u32 %v206_v0, 7  ;;  %467 = vmatprep.mubr.bf16.mxu0 %v636_v53  ;;  %616 = vset.pattern.permute.xlu0 %v636_v53  ;;  %s637_s8 = smov 112   ;;  %s638_s9 = smov 127   ;;  %vm409_vm5 = vcmask 769024   ;;  %vm395_vm6 = vcmask 777216   ;;  %vm428_vm7 = vcmask 1043456  }
   0xe   : > { %s192_s25 = scalar_lea.vmem %s739_s0, %s553_s21  ;;  %vm384_vm8 = vcmask 785408   ;;  %vm356_vm9 = vcmask 908288   ;;  %vm370_vm10 = vcmask 900096   ;;  %vm331_vm11 = vcmask 1031168   ;;  %s552_s14 = sshll.u32 %s745_s16, 4 }
   0xf   : > { %v228_v3 = vsub.s32 2, %v207_v1  ;;  %v208_v4 = vsub.s32 0, %v207_v1  ;;  %v232_v5 = vsub.s32 6, %v207_v1  ;;  %v212_v6 = vsub.s32 4, %v207_v1  ;;  %v687_v15 = vld [vmem:[%s192_s25 + $0x8] sm:$0xff]  ;;  %v204_v16 = vld [vmem:[%s192_s25 + $0x10] sm:$0xff] }
  0x10   : > { %v692_v17 = vpack.i.bf16 %v204_v16, %v687_v15  ;;  %v696_v18 = vld [vmem:[%s192_s25] sm:$0xff]  ;;  %vm345_vm12 = vcmask 916480   ;;  %vm317_vm13 = vcmask 1039360   ;;  %vm424_vm14 = vcmask 588800  }
  0x11   : > { %v229_v7 = vrot.slane %v201_v2, %v228_v3  ;;  %v209_v8 = vrot.slane %v201_v2, %v208_v4  ;;  %v233_v9 = vrot.slane %v201_v2, %v232_v5  ;;  %v213_v10 = vrot.slane %v201_v2, %v212_v6 }
  0x13   : > { %v239_v11 = vrot.slane %v229_v7, %v228_v3  ;;  %v675_v12 = vrot.slane %v209_v8, %v208_v4  ;;  %v243_v13 = vrot.slane %v233_v9, %v228_v3  ;;  %v678_v14 = vrot.slane %v213_v10, %v208_v4 }
  0x15   : > { %296 = vrot.lane.b32.xlu0 %v239_v11, %s625_s19  ;;  %284 = vrot.lane.b32.xlu1 %v675_v12, %s626_s20 }
  0x19   : > { %298 = vrot.lane.b32.xlu0 %v243_v13, %s625_s19  ;;  %286 = vrot.lane.b32.xlu1 %v678_v14, %s626_s20  ;;  %s197_s19 = scalar_lea.vmem %s743_s4, %s552_s14 }
  0x1d   : > { %272 = vrot.lane.b32.xlu0 %v239_v11, %s627_s22  ;;  %274 = vrot.lane.b32.xlu1 %v243_v13, %s627_s22 }
  0x21   : > { %246 = vrot.lane.b32.xlu0 %v239_v11, %s628_s26  ;;  %248 = vrot.lane.b32.xlu1 %v243_v13, %s628_s26 }
  0x25   : > { %260 = vrot.lane.b32.xlu0 %v675_v12, %s629_s27  ;;  %262 = vrot.lane.b32.xlu1 %v678_v14, %s629_s27 }
  0x29   : > { %582 = vrot.lane.b32.xlu0 %v692_v17, %s630_s28  ;;  %577 = vrot.lane.b32.xlu1 %v692_v17, %s631_s29 }
  0x2d   : > { %350 = vrot.lane.b32.xlu0 %v696_v18, %s630_s28  ;;  %389 = vrot.lane.b32.xlu1 %v696_v18, %s631_s29 }
  0x87   : > { %v297_v19 = vpop.permute.xlu0 %296  ;;  %v285_v20 = vpop.permute.xlu1 %284 }
  0x88   : > { %v293_v21 = vmul.f32 %v285_v20, %v696_v18  ;;  %v305_v27 = vmul.f32 %v297_v19, %v696_v18 }
  0x8a   : > { %378 = vrot.lane.b32.xlu0 %v293_v21, %s632_s30 }
  0x8b   : > { %v299_v22 = vpop.permute.xlu0 %298  ;;  %v287_v23 = vpop.permute.xlu1 %286 }
  0x8c   : > { %v301_v24 = vsel %vm300_vm0, %v297_v19, %v299_v22  ;;  %v307_v25 = vmul.f32 %v299_v22, %v204_v16  ;;  %v289_v26 = vsel %vm288_vm1, %v285_v20, %v287_v23  ;;  %v295_v30 = vmul.f32 %v287_v23, %v204_v16 }
  0x8d   : > { %v306_v28 = vmul.f32 %v301_v24, %v687_v15  ;;  %v294_v29 = vmul.f32 %v289_v26, %v687_v15 }
  0x8e   : > { %407 = vrot.lane.b32.xlu1 %v307_v25, %s633_s5 }
  0x8f   : > { %v273_v31 = vpop.permute.xlu0 %272  ;;  %v275_v32 = vpop.permute.xlu1 %274  ;;  %v586_v33 = vpack.i.bf16 %v306_v28, %v305_v27  ;;  %v591_v38 = vpack.i.bf16 %v295_v30, %v294_v29 }
  0x90   : > { %v281_v34 = vmul.f32 %v273_v31, %v696_v18  ;;  %v277_v35 = vsel %vm276_vm2, %v273_v31, %v275_v32  ;;  %v283_v36 = vmul.f32 %v275_v32, %v204_v16 }
  0x91   : > { %v282_v37 = vmul.f32 %v277_v35, %v687_v15  ;;  %587 = vrot.lane.b32.xlu0 %v586_v33, %s633_s5 }
  0x92   : > { %364 = vrot.lane.b32.xlu1 %v281_v34, %s634_s6 }
  0x93   : > { %v596_v39 = vpack.i.bf16 %v283_v36, %v282_v37  ;;  %v247_v40 = vpop.permute.xlu0 %246  ;;  %v249_v41 = vpop.permute.xlu1 %248 }
  0x94   : > { %v251_v42 = vsel %vm250_vm3, %v247_v40, %v249_v41  ;;  %v255_v43 = vmul.f32 %v247_v40, %v696_v18  ;;  %v257_v45 = vmul.f32 %v249_v41, %v204_v16 }
  0x95   : > { %592 = vrot.lane.b32.xlu0 %v591_v38, %s632_s30  ;;  %v256_v44 = vmul.f32 %v251_v42, %v687_v15 }
  0x96   : > { %597 = vrot.lane.b32.xlu1 %v596_v39, %s634_s6 }
  0x97   : > { %v261_v46 = vpop.permute.xlu0 %260  ;;  %v263_v47 = vpop.permute.xlu1 %262  ;;  %v601_v51 = vpack.i.bf16 %v257_v45, %v256_v44  ;;  %v225_v45 = vmul.f32 %v678_v14, %v687_v15  ;;  %v199_v14 = vld [vmem:[%s740_s1] sm:$0xf] }
  0x98   : > { %v265_v48 = vsel %vm264_vm4, %v261_v46, %v263_v47  ;;  %v271_v49 = vmul.f32 %v263_v47, %v204_v16  ;;  %v269_v54 = vmul.f32 %v261_v46, %v696_v18 }
  0x99   : > { %v270_v50 = vmul.f32 %v265_v48, %v687_v15  ;;  %325 = vrot.lane.b32.xlu0 %v255_v43, %s635_s7 }
  0x9b   : > { %v606_v52 = vpack.i.bf16 %v271_v49, %v270_v50  ;;  %v583_v56 = vpop.permute.xlu0 %582  ;;  %v578_v57 = vpop.permute.xlu1 %577 }
  0x9c   : > { %v580_v2 = vunpack.i.h.bf16 %v578_v57  ;;  %v579_v3 = vunpack.i.l.bf16 %v578_v57  ;;  %v585_v6 = vunpack.i.h.bf16 %v583_v56  ;;  %v584_v7 = vunpack.i.l.bf16 %v583_v56 }
  0x9d   : > { %607 = vrot.lane.b32.xlu1 %v606_v52, %s637_s8  ;;  %602 = vrot.lane.b32.xlu0 %v601_v51, %s635_s7  ;;  %v224_v51 = vmul.f32 %v675_v12, %v696_v18 }
  0x9e   : > { %v397_v23 = vsel %vm395_vm6, %v579_v3, %v580_v2  ;;  %v358_v28 = vsel %vm356_vm9, %v584_v7, %v585_v6 }
  0x9f   : > { %v351_v58 = vpop.permute.xlu0 %350  ;;  %v390_v59 = vpop.permute.xlu1 %389 }
  0xa0   : > { %v396_v21 = vsel %vm395_vm6, %v390_v59, %v579_v3  ;;  %v357_v32 = vsel %vm356_vm9, %v351_v58, %v584_v7 }
  0xa1   : > { %339 = vrot.lane.b32.xlu1 %v269_v54, %s637_s8  ;;  %612 = vrot.lane.b32.xlu0 %v692_v17, %s638_s9 }
  0xa5   : > { %311 = vrot.lane.b32.xlu1 %v696_v18, %s638_s9  ;;  %478 = vperm.xlu0 %616, %v200_v55  }
  0xfc   : > { %v379_v60 = vpop.permute.xlu0 %378 }
 0x100   : > { %v408_v61 = vpop.permute.xlu1 %407 }
 0x103   : > { %v588_v62 = vpop.permute.xlu0 %587 }
 0x104   : > { %v590_v63 = vunpack.i.h.bf16 %v588_v62  ;;  %v589_v0 = vunpack.i.l.bf16 %v588_v62  ;;  %v365_v1 = vpop.permute.xlu1 %364 }
 0x106   : > { %v411_v4 = vsel %vm409_vm5, %v590_v63, %v408_v61  ;;  %v410_v5 = vsel %vm409_vm5, %v589_v0, %v590_v63 }
 0x107   : > { %v593_v8 = vpop.permute.xlu0 %592  ;;  %v423_v9 = vpack.c.bf16 %v411_v4, %v411_v4  ;;  %v422_v10 = vpack.c.bf16 %v410_v5, %v410_v5 }
 0x108   : > { %v595_v11 = vunpack.i.h.bf16 %v593_v8  ;;  %v594_v13 = vunpack.i.l.bf16 %v593_v8  ;;  %v598_v16 = vpop.permute.xlu1 %597 }
 0x109   : > { %v600_v17 = vunpack.i.h.bf16 %v598_v16  ;;  %v599_v19 = vunpack.i.l.bf16 %v598_v16  ;;  %548 = vmatprep.subr.msk.bf16.mxu0 %vm428_vm7, %v423_v9  ;;  %v430_v20 = vsel %vm428_vm7, %v422_v10, 0 }
 0x10a   : > { %442 = vmatpush1.bf16.msra.mxu0 %v430_v20  ;;  %v386_v22 = vsel %vm384_vm8, %v594_v13, %v595_v11  ;;  %v385_v24 = vsel %vm384_vm8, %v379_v60, %v594_v13 }
 0x10b   : > { %v326_v25 = vpop.permute.xlu0 %325  ;;  %v421_v26 = vpack.c.bf16 %v397_v23, %v386_v22  ;;  %v420_v27 = vpack.c.bf16 %v396_v21, %v385_v24  ;;  %v372_v29 = vsel %vm370_vm10, %v599_v19, %v600_v17  ;;  %v371_v31 = vsel %vm370_vm10, %v365_v1, %v599_v19 }
 0x10c   : > { %v419_v30 = vpack.c.bf16 %v372_v29, %v358_v28  ;;  %v418_v35 = vpack.c.bf16 %v371_v31, %v357_v32 }
 0x10d   : > { %443 = vmatprep.subr.bf16.mxu0 %v421_v26 }
 0x10e   : > { %444 = vmatpush1.bf16.msra.mxu0 %v420_v27 }
 0x10f   : > { %v608_v33 = vpop.permute.xlu1 %607  ;;  %445 = vmatprep.subr.bf16.mxu0 %v419_v30  ;;  %v603_v34 = vpop.permute.xlu0 %602 }
 0x110   : > { %v610_v36 = vunpack.i.h.bf16 %v608_v33  ;;  %v609_v37 = vunpack.i.l.bf16 %v608_v33  ;;  %v605_v38 = vunpack.i.h.bf16 %v603_v34  ;;  %v604_v39 = vunpack.i.l.bf16 %v603_v34 }
 0x112   : > { %446 = vmatpush1.bf16.msra.mxu0 %v418_v35  ;;  %v333_v40 = vsel %vm331_vm11, %v604_v39, %v605_v38  ;;  %v347_v41 = vsel %vm345_vm12, %v609_v37, %v610_v36  ;;  %v332_v46 = vsel %vm331_vm11, %v326_v25, %v604_v39 }
 0x113   : > { %v340_v42 = vpop.permute.xlu1 %339  ;;  %v613_v43 = vpop.permute.xlu0 %612  ;;  %v417_v44 = vpack.c.bf16 %v347_v41, %v333_v40 }
 0x114   : > { %v346_v47 = vsel %vm345_vm12, %v340_v42, %v609_v37  ;;  %v615_v48 = vunpack.i.h.bf16 %v613_v43  ;;  %v614_v49 = vunpack.i.l.bf16 %v613_v43 }
 0x115   : > { %v416_v50 = vpack.c.bf16 %v346_v47, %v332_v46  ;;  %447 = vmatprep.subr.bf16.mxu0 %v417_v44 }
 0x116   : > { %v319_v52 = vsel %vm317_vm13, %v614_v49, %v615_v48 }
 0x117   : > { %v312_v53 = vpop.permute.xlu1 %311  ;;  %448 = vmatpush1.bf16.msra.mxu0 %v416_v50  ;;  %v415_v54 = vpack.c.bf16 %v319_v52, %v225_v45 }
 0x118   : > { %v318_v55 = vsel %vm317_vm13, %v312_v53, %v614_v49 }
 0x119   : > { %v414_v56 = vpack.c.bf16 %v318_v55, %v224_v51  ;;  %449 = vmatprep.subr.bf16.mxu0 %v415_v54 }
 0x11b   : > { %450 = vmatpush1.bf16.msra.mxu0 %v414_v56 }
 0x11e   : > { %549 = vmatmul.mubr.msk.bf16.vlgmr.msra.gmra.mxu0 %vm424_vm14, %v199_v14 }
 0x120   : > { %v479_v15 = vpop.permute.xlu0 %478 }
 0x1de   : > { %v469_v12 = vpop.f32.mrf.mxu0 }
 0x1df   : > { %v481_v18 = vmul.f32 %v479_v15, %v469_v12 }
 0x1e0   : > { %v471_v57 = vpop.f32.mrf.mxu0 }
 0x1e1   : > { %483 = vst [vmem:[%s197_s19] sm:$0xff] %v481_v18  ;;  %v482_v58 = vmul.f32 %v479_v15, %v471_v57 }
 0x1e2   : > { %v473_v59 = vpop.f32.mrf.mxu0 }
 0x1e3   : > { %484 = vst [vmem:[%s197_s19 + $0x8] sm:$0xff] %v482_v58 }
 0x1e4   : > { %v474_v60 = vpop.f32.mrf.mxu0 }
 0x1e5 PF: > { %s14_s15 = sadd.s32 1, %s623_s15  }
 0x1e6   : > { %p11_p4 = scmp.ge.s32.totalorder %s14_s15, 4  }
 0x1e8   :  { %13 = sbr.rel (!%p11_p4) target bundleno = 1 (0x1), region = 66 }

</bundles_post_ra>
